<compile_context>
chip_gen: v7x
topology: tpu7x:2x2x1
jax: 0.10.0
libtpu: 0.0.40
codegen_flags: <defaults>
</compile_context>

<pallas_src>
import functools

import jax
import jax.numpy as jnp
from jax import lax
from jax.experimental import pallas as pl
from jax.experimental.pallas import tpu as pltpu


def _max_prob_kernel(x_ref, o_ref, acc_ref, *, cls_id, n_hw, tile_n,
                     tiles_per_split, need_mask):
    """One grid step = one (split, batch, candidate-tile) block.

    x_ref  : (5, 5+num_cls, tile_n)   anchors x channels x positions
    o_ref  : (1, 1, 1)                per-(batch, split) max, resident across tiles
    acc_ref: (5, 1, tile_n) f32       running per-lane partial max (VMEM scratch)
    """
    t = pl.program_id(2)

    # (Re)initialize the partial-max scratch at the first tile of each (split, batch).
    @pl.when(t == 0)
    def _():
        acc_ref[...] = jnp.full(acc_ref.shape, -jnp.inf, acc_ref.dtype)

    # Upcast so bf16 inputs work on all generations (v5e has no bf16 EUP/VPU path).
    x = x_ref[...].astype(jnp.float32)                      # (5, c, tile_n)

    # Static keep-dims row slices instead of masked 65-row max reductions. Neither
    # crosses an (8,128) tile boundary with a range slice.
    obj_logit = x[:, 4:5, :]                                # (5, 1, tile_n)
    cls_logit = x[:, 5 + cls_id:6 + cls_id, :]              # (5, 1, tile_n)

    # Max-free single-class softmax: softmax(x)[cls] = 1 / sum_j exp(x_j - x_cls).
    # denom >= 1 (contains exp(0) = 1); overflow -> inf -> rcp -> 0 is the correct limit.
    ch = lax.broadcasted_iota(jnp.int32, x.shape, 1)
    shifted = jnp.where(ch >= 5, x - cls_logit, -jnp.inf)   # class channels only
    denom = jnp.sum(jnp.exp(shifted), axis=1, keepdims=True)  # (5, 1, tile_n)

    objness = jax.nn.sigmoid(obj_logit)
    conf_cls = pl.reciprocal(denom, approx=True)            # EUP vrcp (free-ish slot)

    # config.loss_target(obj, cls) = obj * cls  (standard adversarial-yolo target)
    # TODO(synk): other configs use plain `obj` or `cls`; swap here if needed.
    confs = objness * conf_cls                              # (5, 1, tile_n)

    if need_mask:
        # -inf the lanes past the end of the candidate axis (ragged last tile, or the
        # clamped duplicate block of the second split). Also discards any garbage/NaN
        # from Pallas' padded boundary reads.
        s = pl.program_id(0)
        lane = lax.broadcasted_iota(jnp.int32, confs.shape, 2)
        pos = (s * tiles_per_split + t) * tile_n + lane
        confs = jnp.where(pos < n_hw, confs, -jnp.inf)

    # VPU-only elementwise fold into the resident partial-max scratch.
    acc_ref[...] = jnp.maximum(acc_ref[...], confs)

    # Single cross-lane/cross-sublane reduce + 1x1 store, once per (split, batch).
    @pl.when(t == tiles_per_split - 1)
    def _():
        o_ref[...] = jnp.max(acc_ref[...]).reshape(1, 1, 1)


def _pick_tile_n(n_hw, bytes_per_lane, max_tile_n=2048,
                 max_block_bytes=2 * 1024 * 1024):
    """Largest lane-dense candidate tile under the per-buffer VMEM byte cap.

    If the whole candidate axis already fits under the cap, take it in one
    full-extent block (legal even when not a multiple of 128, no tail masking);
    otherwise pick the biggest multiple-of-128 tile <= max_tile_n under the cap.
    """
    best = 128
    for t in (2048, 1024, 512, 256, 128):
        if t <= max_tile_n and t * bytes_per_lane <= max_block_bytes:
            best = t
            break
    if n_hw <= best:
        return n_hw
    return best


def max_prob_extractor(yolo_output, cls_id, num_cls, *, max_tile_n=2048):
    if yolo_output.ndim == 3:
        yolo_output = yolo_output[None]
    b, c_total, h, w = yolo_output.shape
    c = 5 + num_cls
    assert c_total == c * 5
    assert 0 <= cls_id < num_cls
    n_hw = h * w

    # Free reshape only (no materialized HBM transpose): (b, 5, c, h*w). The PyTorch
    # transpose(1, 2) is absorbed by folding the anchor axis into the kernel block.
    x = yolo_output.reshape(b, 5, c, n_hw)

    bytes_per_lane = 5 * c * jnp.dtype(yolo_output.dtype).itemsize
    tile_n = _pick_tile_n(n_hw, bytes_per_lane, max_tile_n)
    num_tiles = pl.cdiv(n_hw, tile_n)

    # Split the candidate-tile reduction across a leading "parallel" axis so both v7x
    # TensorCores stay busy even at batch == 1; the wrapper takes the final max.
    n_splits = 2 if num_tiles >= 2 else 1
    tiles_per_split = pl.cdiv(num_tiles, n_splits)
    need_mask = (n_splits * tiles_per_split * tile_n) != n_hw

    grid = (n_splits, b, tiles_per_split)

    def x_index_map(s, i, t):
        blk = s * tiles_per_split + t
        if need_mask:
            # Clamp so a possibly duplicated trailing step of the second split stays
            # in range; its lanes are masked to -inf inside the kernel.
            blk = jnp.minimum(blk, num_tiles - 1)
        return (i, 0, 0, blk)

    kernel = functools.partial(
        _max_prob_kernel, cls_id=cls_id, n_hw=n_hw, tile_n=tile_n,
        tiles_per_split=tiles_per_split, need_mask=need_mask)

    out = pl.pallas_call(
        kernel,
        out_shape=jax.ShapeDtypeStruct((b, n_splits, 1), jnp.float32),
        grid_spec=pltpu.PrefetchScalarGridSpec(
            num_scalar_prefetch=0,
            grid=grid,
            # Batch dim squeezed -> kernel sees a (5, c, tile_n) block (anchors folded).
            in_specs=[pl.BlockSpec((None, 5, c, tile_n), x_index_map)],
            # Same output block for all tiles t: resident per-(batch, split) accumulator.
            out_specs=pl.BlockSpec((1, 1, 1), lambda s, i, t: (i, s, 0)),
            scratch_shapes=[pltpu.VMEM((5, 1, tile_n), jnp.float32)],
        ),
        compiler_params=pltpu.CompilerParams(
            # split/batch independent (megacore-shardable); tile axis is the reduction
            # accumulating into the resident output block + scratch.
            dimension_semantics=("parallel", "parallel", "arbitrary")),
    )(x)

    # Per-(split, batch) partial maxima -> final max. Always return float32 (PyTorch
    # returns f32 even for half-precision YOLO heads).
    return jnp.max(out, axis=(1, 2))


def _reference(yolo_output, cls_id, num_cls):
    # Pure-JAX reference mirroring the PyTorch forward (with the explicit transpose).
    if yolo_output.ndim == 3:
        yolo_output = yolo_output[None]
    b, _, h, w = yolo_output.shape
    c = 5 + num_cls
    out = yolo_output.reshape(b, 5, c, h * w)
    out = jnp.transpose(out, (0, 2, 1, 3)).reshape(b, c, 5 * h * w)
    objness = jax.nn.sigmoid(out[:, 4, :])
    normal_confs = jax.nn.softmax(out[:, 5:5 + num_cls, :], axis=1)
    confs_for_class = normal_confs[:, cls_id, :]
    confs_if_object = objness * confs_for_class
    return jnp.max(confs_if_object, axis=1)


if __name__ == "__main__":
    cls_id = 0
    num_cls = 8          # -> channels = (5 + 8) * 5 = 65

    # Tolerance note: pl.reciprocal(approx=True) makes the softmax denominator not
    # bit-identical to the PyTorch softmax (relative error ~1e-3 level).
    TOL = 2e-2

    key = jax.random.PRNGKey(0)
    k1, k2, k3 = jax.random.split(key, 3)

    # Case 1: batch of 2, 16x16 map -> single full-axis tile, no split, no masking.
    y1 = jax.random.normal(k1, (2, (5 + num_cls) * 5, 16, 16), dtype=jnp.float32)
    out1 = jax.block_until_ready(max_prob_extractor(y1, cls_id, num_cls))
    ref1 = _reference(y1, cls_id, num_cls)
    assert out1.shape == (2,) and out1.dtype == jnp.float32
    assert jnp.allclose(out1, ref1, atol=TOL, rtol=TOL), (out1, ref1)

    # Case 2: 3-D input (unsqueeze path) with an odd 13x13 map -> full-extent block.
    y2 = jax.random.normal(k2, ((5 + num_cls) * 5, 13, 13), dtype=jnp.float32)
    out2 = jax.block_until_ready(max_prob_extractor(y2, cls_id, num_cls))
    ref2 = _reference(y2, cls_id, num_cls)
    assert out2.shape == (1,)
    assert jnp.allclose(out2, ref2, atol=TOL, rtol=TOL), (out2, ref2)

    # Case 3: bf16 input, batch 1, 20x20 map with max_tile_n=128 to exercise the
    # multi-tile path: ragged-tail lane masking + the 2-way core split (grid (2,1,2)).
    y3 = jax.random.normal(k3, (1, (5 + num_cls) * 5, 20, 20),
                           dtype=jnp.float32).astype(jnp.bfloat16)
    out3 = jax.block_until_ready(
        max_prob_extractor(y3, cls_id, num_cls, max_tile_n=128))
    ref3 = _reference(y3.astype(jnp.float32), cls_id, num_cls)
    assert out3.shape == (1,) and out3.dtype == jnp.float32
    assert jnp.allclose(out3, ref3, atol=TOL, rtol=TOL), (out3, ref3)

    print("KERNEL_OK")
</pallas_src>

<mosaic_0001>
module attributes {stable_mosaic.version = 11 : i64} {
  func.func @_max_prob_kernel(%arg0: i32, %arg1: i32, %arg2: i32, %arg3: memref<1x5x13x256xf32, #tpu.memory_space<vmem>>, %arg4: memref<1x1x1xf32, #tpu.memory_space<vmem>>, %arg5: memref<5x1x256xf32, #tpu.memory_space<vmem>>) attributes {dimension_semantics = [#tpu.dimension_semantics<parallel>, #tpu.dimension_semantics<parallel>, #tpu.dimension_semantics<arbitrary>], iteration_bounds = array<i64: 1, 2, 1>, scalar_prefetch = 0 : i64, scratch_operands = 1 : i64, tpu.core_type = #tpu.core_type<tc>, window_params = [{transform_indices = @transform_0, window_bounds = array<i64: 1, 5, 13, 256>}, {transform_indices = @transform_1, window_bounds = array<i64: 1, 1, 1>}]} {
    %c0_i32 = arith.constant 0 : i32
    %0 = arith.cmpi eq, %arg2, %c0_i32 : i32
    %1 = arith.extui %0 : i1 to i32
    %c0_i32_0 = arith.constant 0 : i32
    %2 = arith.cmpi ne, %1, %c0_i32_0 : i32
    scf.if %2 {
      %cst_14 = arith.constant 0xFF800000 : f32
      %30 = vector.broadcast %cst_14 : f32 to vector<5x1x256xf32>
      %c0_15 = arith.constant 0 : index
      %c0_16 = arith.constant 0 : index
      %c0_17 = arith.constant 0 : index
      %31 = vector.load %arg5[%c0_15, %c0_16, %c0_17] : memref<5x1x256xf32, #tpu.memory_space<vmem>>, vector<5x1x256xf32>
      tpu.vector_store %arg5[%c0_15, %c0_16, %c0_17], %30 {strides = array<i32>} : memref<5x1x256xf32, #tpu.memory_space<vmem>>, vector<5x1x256xf32>,
    } else {
    }
    %c0 = arith.constant 0 : index
    %c0_1 = arith.constant 0 : index
    %c0_2 = arith.constant 0 : index
    %c0_3 = arith.constant 0 : index
    %3 = vector.load %arg3[%c0, %c0_1, %c0_2, %c0_3] : memref<1x5x13x256xf32, #tpu.memory_space<vmem>>, vector<1x5x13x256xf32>
    %4 = vector.shape_cast %3 : vector<1x5x13x256xf32> to vector<5x13x256xf32>
    %5 = vector.extract_strided_slice %4 {offsets = [0, 4, 0], sizes = [5, 1, 256], strides = [1, 1, 1]} : vector<5x13x256xf32> to vector<5x1x256xf32>
    %6 = vector.extract_strided_slice %4 {offsets = [0, 5, 0], sizes = [5, 1, 256], strides = [1, 1, 1]} : vector<5x13x256xf32> to vector<5x1x256xf32>
    %7 = tpu.iota {dimensions = array<i32: 1>} : vector<5x13x256xi32>
    %c5_i32 = arith.constant 5 : i32
    %8 = vector.broadcast %c5_i32 : i32 to vector<5x13x256xi32>
    %9 = arith.cmpi sge, %7, %8 : vector<5x13x256xi32>
    %10 = vector.broadcast %6 : vector<5x1x256xf32> to vector<5x13x256xf32>
    %11 = arith.subf %4, %10 : vector<5x13x256xf32>
    %cst = arith.constant 0xFF800000 : f32
    %12 = vector.broadcast %cst : f32 to vector<5x13x256xf32>
    %13 = arith.select %9, %11, %12 : vector<5x13x256xi1>, vector<5x13x256xf32>
    %14 = math.exp %13 : vector<5x13x256xf32>
    %cst_4 = arith.constant dense<0.000000e+00> : vector<5x256xf32>
    %15 = vector.multi_reduction <add>, %14, %cst_4 [1] : vector<5x13x256xf32> to vector<5x256xf32>
    %16 = vector.shape_cast %15 : vector<5x256xf32> to vector<5x1x256xf32>
    %17 = arith.negf %5 : vector<5x1x256xf32>
    %18 = math.exp %17 : vector<5x1x256xf32>
    %cst_5 = arith.constant 1.000000e+00 : f32
    %19 = vector.broadcast %cst_5 : f32 to vector<5x1x256xf32>
    %20 = arith.addf %19, %18 : vector<5x1x256xf32>
    %21 = arith.divf %19, %20 : vector<5x1x256xf32>
    %22 = tpu.reciprocal %16 {approx = true} : vector<5x1x256xf32> -> vector<5x1x256xf32>
    %23 = arith.mulf %21, %22 : vector<5x1x256xf32>
    %c0_6 = arith.constant 0 : index
    %c0_7 = arith.constant 0 : index
    %c0_8 = arith.constant 0 : index
    %24 = vector.load %arg5[%c0_6, %c0_7, %c0_8] : memref<5x1x256xf32, #tpu.memory_space<vmem>>, vector<5x1x256xf32>
    %25 = arith.maximumf %24, %23 : vector<5x1x256xf32>
    %c0_9 = arith.constant 0 : index
    %c0_10 = arith.constant 0 : index
    %c0_11 = arith.constant 0 : index
    %26 = vector.load %arg5[%c0_9, %c0_10, %c0_11] : memref<5x1x256xf32, #tpu.memory_space<vmem>>, vector<5x1x256xf32>
    tpu.vector_store %arg5[%c0_9, %c0_10, %c0_11], %25 {strides = array<i32>} : memref<5x1x256xf32, #tpu.memory_space<vmem>>, vector<5x1x256xf32>,
    %c0_i32_12 = arith.constant 0 : i32
    %27 = arith.cmpi eq, %arg2, %c0_i32_12 : i32
    %28 = arith.extui %27 : i1 to i32
    %c0_i32_13 = arith.constant 0 : i32
    %29 = arith.cmpi ne, %28, %c0_i32_13 : i32
    scf.if %29 {
      %c0_14 = arith.constant 0 : index
      %c0_15 = arith.constant 0 : index
      %c0_16 = arith.constant 0 : index
      %30 = vector.load %arg5[%c0_14, %c0_15, %c0_16] : memref<5x1x256xf32, #tpu.memory_space<vmem>>, vector<5x1x256xf32>
      %31 = vector.shape_cast %30 : vector<5x1x256xf32> to vector<1x5x1x256xf32>
      %cst_17 = arith.constant dense<0xFF800000> : vector<1xf32>
      %32 = vector.multi_reduction <maximumf>, %31, %cst_17 [1, 2, 3] : vector<1x5x1x256xf32> to vector<1xf32>
      %33 = vector.shape_cast %32 : vector<1xf32> to vector<1x1x1x1xf32>
      %34 = vector.extract %33[0, 0, 0, 0] : f32 from vector<1x1x1x1xf32>
      %35 = vector.broadcast %34 : f32 to vector<1x1x1xf32>
      %c0_18 = arith.constant 0 : index
      %c0_19 = arith.constant 0 : index
      %c0_20 = arith.constant 0 : index
      %36 = vector.load %arg4[%c0_18, %c0_19, %c0_20] : memref<1x1x1xf32, #tpu.memory_space<vmem>>, vector<1x1x1xf32>
      tpu.vector_store %arg4[%c0_18, %c0_19, %c0_20], %35 {strides = array<i32>} : memref<1x1x1xf32, #tpu.memory_space<vmem>>, vector<1x1x1xf32>,
    } else {
    }
    return
  }
  func.func @transform_0(%arg0: i32, %arg1: i32, %arg2: i32) -> (i32, i32, i32, i32) {
    %c1_i32 = arith.constant 1 : i32
    %0 = arith.muli %arg0, %c1_i32 : i32
    %1 = arith.addi %0, %arg2 : i32
    %c0_i32 = arith.constant 0 : i32
    %c0_i32_0 = arith.constant 0 : i32
    %c0_i32_1 = arith.constant 0 : i32
    return %arg1, %c0_i32, %c0_i32_0, %1 : i32, i32, i32, i32
  }
  func.func @transform_1(%arg0: i32, %arg1: i32, %arg2: i32) -> (i32, i32, i32) {
    %c0_i32 = arith.constant 0 : i32
    %c0_i32_0 = arith.constant 0 : i32
    return %arg1, %arg0, %c0_i32 : i32, i32, i32
  }
}

</mosaic_0001>

<bundles_post_ra>
// kernel: tpu_custom_call.1
= control target key start
LH: loop header
LB: loop body
LE: loop exit
PB: predicated region body
PF: predicated region fallthrough
CT: control target
= control target key end

     0   :  { %s943_s6 = smov 0   ;;  %s945_s7 = smov 0   ;;  %s1133_s0 = inlined_call_operand.vmem [shape: f32[2,5,13,256], index: 0, kind: input, shape index: {}]   ;;  %s1134_s1 = inlined_call_operand.vmem [shape: f32[2,1,1], index: 1, kind: output, shape index: {}]  }
   0x1   :  { %s947_s8 = smov 0  }
   0x2 LB: > { %s26_s9 = sadd.s32 1, %s925_s7  ;;  %p764_p0 = scmp.ge.s32.totalorder %s929_s8, 1  ;;  %s929_s8 = sphi %s947_s8, %s11_s8   ;;  %s925_s7 = sphi %s945_s7, %s1138_s7   ;;  %s921_s6 = sphi %s943_s6, %s1137_s6  }
   0x3   : > { %p28_p1 = scmp.ge.s32.totalorder %s26_s9, 2  ;;  %p119_p2 = scmp.lt.s32.totalorder %s929_s8, 3 }
   0x5   : > { %s1140_s9 = smov (%p28_p1, %s26_s9), 0  ;;  %p120_p3 = pnand %p764_p0, %p119_p2 }
   0x6   : > { %p147_p4 = scmp.lt.s32.totalorder (!%p120_p3), %s921_s6, 1  ;;  %v167_v0 = vlaneseq (!%p120_p3)  ;;  %v931_v3 = vmov (!%p120_p3), -inf   ;;  %vm321_vm2 = vcmask (!%p120_p3), 1044480   ;;  %vm654_vm3 = vcmask (!%p120_p3), 1040384  }
   0x7   : > { %123 = sbr.rel (%p120_p3) target bundleno = 323 (0x143), region = 24  ;;  %vm684_vm4 = vcmask (!%p120_p3), 0  }
   0x8   : > { %vm963_vm0 = vcmp.lt.s32.totalorder (!%p120_p3), %v167_v0, 256  ;;  %v967_v2 = vshrl.u32 (!%p120_p3), %v167_v0, 7 }
   0x9   : > { %171 = vst.msk [vmem:[#allocation2] sm:$0x3] (!%p120_p3), %vm963_vm0, %v931_v3  ;;  %172 = vst.msk [vmem:[#allocation2 + $0x2] sm:$0x3] (!%p120_p3), %vm963_vm0, %v931_v3 }
   0xa   : > { %173 = vst.msk [vmem:[#allocation2 + $0x4] sm:$0x3] (!%p120_p3), %vm963_vm0, %v931_v3  ;;  %174 = vst.msk [vmem:[#allocation2 + $0x6] sm:$0x3] (!%p120_p3), %vm963_vm0, %v931_v3  ;;  %v203_v4 = vsub.s32 (!%p120_p3), 5, %v967_v2  ;;  %vm199_vm1 = vcmp.ge.s32.totalorder (!%p120_p3), %v967_v2, 5 }
   0xb   : > { %175 = vst.msk [vmem:[#allocation2 + $0x8] sm:$0x3] (!%p120_p3), %vm963_vm0, %v931_v3 }
   0xe   : > { %s1142_s6 = smov (!%p147_p4, %s921_s6), 1 }
   0xf   : > { %s778_s10 = smul.u32 160, %s1142_s6  ;;  %s162_s16 = scalar_lea.vmem %s1134_s1, %s1142_s6 }
  0x11   : > { %s984_s13 = scalar_lea.vmem %s1133_s0, %s778_s10 }
  0x12   : > { %v176_v5 = vld [vmem:[%s984_s13] sm:$0xff]  ;;  %v988_v6 = vld [vmem:[%s984_s13 + $0x8] sm:$0xff]  ;;  %v178_v14 = vld [vmem:[%s984_s13 + $0x10] sm:$0x1f] }
  0x13   : > { %v991_v7 = vld [vmem:[%s984_s13 + $0x20] sm:$0xff]  ;;  %v994_v8 = vld [vmem:[%s984_s13 + $0x28] sm:$0xff]  ;;  %v204_v9 = vrot.slane %v176_v5, %v203_v4  ;;  %v208_v10 = vrot.slane %v988_v6, %v203_v4  ;;  %v179_v18 = vld [vmem:[%s984_s13 + $0x18] sm:$0x1f]  ;;  %v766_v30 = vmul.f32 -1.442695, %v176_v5 }
  0x14   : > { %v212_v11 = vrot.slane %v991_v7, %v203_v4  ;;  %v216_v12 = vrot.slane %v994_v8, %v203_v4  ;;  %v1000_v13 = vld [vmem:[%s984_s13 + $0x40] sm:$0xff]  ;;  %v1004_v15 = vld [vmem:[%s984_s13 + $0x48] sm:$0xff]  ;;  %v182_v24 = vld [vmem:[%s984_s13 + $0x30] sm:$0x1f] }
  0x15   : > { %v241_v16 = vsub.f32 %v176_v5, %v204_v9  ;;  %v242_v17 = vsub.f32 %v988_v6, %v208_v10  ;;  %v1010_v19 = vld [vmem:[%s984_s13 + $0x60] sm:$0xff]  ;;  %v1013_v20 = vld [vmem:[%s984_s13 + $0x68] sm:$0xff]  ;;  %v220_v21 = vrot.slane %v1000_v13, %v203_v4  ;;  %v224_v25 = vrot.slane %v1004_v15, %v203_v4  ;;  %v183_v31 = vld [vmem:[%s984_s13 + $0x38] sm:$0x1f] }
  0x16   : > { %v245_v22 = vsub.f32 %v991_v7, %v212_v11  ;;  %v246_v23 = vsub.f32 %v994_v8, %v216_v12  ;;  %v243_v26 = vsub.f32 %v178_v14, %v204_v9  ;;  %v244_v27 = vsub.f32 %v179_v18, %v208_v10  ;;  %v1026_v32 = vld [vmem:[%s984_s13 + $0x80] sm:$0xff]  ;;  %v186_v35 = vld [vmem:[%s984_s13 + $0x50] sm:$0x1f]  ;;  %v1034_v36 = vld [vmem:[%s984_s13 + $0x88] sm:$0xff] }
  0x17   : > { %v261_v28 = vsel %vm199_vm1, %v241_v16, -inf  ;;  %v262_v29 = vsel %vm199_vm1, %v242_v17, -inf  ;;  %v228_v33 = vrot.slane %v1010_v19, %v203_v4  ;;  %v1030_v34 = vrot.slane %v1013_v20, %v203_v4  ;;  %v187_v48 = vld [vmem:[%s984_s13 + $0x58] sm:$0x1f]  ;;  %v190_v52 = vld [vmem:[%s984_s13 + $0x70] sm:$0x1f] }
  0x18   : > { %v247_v37 = vsub.f32 %v182_v24, %v212_v11  ;;  %v249_v38 = vsub.f32 %v1000_v13, %v220_v21  ;;  %v265_v39 = vsel %vm199_vm1, %v245_v22, -inf  ;;  %v266_v40 = vsel %vm199_vm1, %v246_v23, -inf  ;;  %v191_v61 = vld [vmem:[%s984_s13 + $0x78] sm:$0x1f]  ;;  %v194_v11 = vld [vmem:[%s984_s13 + $0x90] sm:$0x1f] }
  0x19   : > { %v250_v41 = vsub.f32 %v1004_v15, %v224_v25  ;;  %v281_v42 = vmul.f32 1.442695, %v261_v28  ;;  %v283_v43 = vmul.f32 1.442695, %v262_v29  ;;  %v285_v44 = vmul.f32 1.442695, %v243_v26 }
  0x1a   : > { %v1043_v45 = vrot.slane %v1026_v32, %v203_v4  ;;  %v248_v46 = vsub.f32 %v183_v31, %v216_v12  ;;  %v287_v47 = vmul.f32 1.442695, %v244_v27  ;;  %807 = vpow2.f32 %v766_v30  ;;  %v195_v16 = vld [vmem:[%s984_s13 + $0x98] sm:$0x1f] }
  0x1b   : > { %v1047_v49 = vrot.slane %v1034_v36, %v203_v4  ;;  %v251_v50 = vsub.f32 %v186_v35, %v220_v21  ;;  %809 = vpow2.f32 %v281_v42  ;;  %v289_v51 = vmul.f32 1.442695, %v265_v39 }
  0x1c   : > { %v253_v53 = vsub.f32 %v1010_v19, %v228_v33  ;;  %v269_v54 = vsel %vm199_vm1, %v249_v38, -inf  ;;  %811 = vpow2.f32 %v283_v43  ;;  %v291_v55 = vmul.f32 1.442695, %v266_v40 }
  0x1d   : > { %v254_v56 = vsub.f32 %v1013_v20, %v1030_v34  ;;  %v270_v57 = vsel %vm199_vm1, %v250_v41, -inf  ;;  %813 = vpow2.f32 %v285_v44  ;;  %v293_v58 = vmul.f32 1.442695, %v247_v37 }
  0x1e   : > { %v252_v59 = vsub.f32 %v187_v48, %v224_v25  ;;  %815 = vpow2.f32 %v287_v47  ;;  %v295_v60 = vmul.f32 1.442695, %v248_v46  ;;  %v255_v62 = vsub.f32 %v190_v52, %v228_v33 }
  0x1f   : > { %817 = vpow2.f32 %v289_v51  ;;  %v297_v63 = vmul.f32 1.442695, %v269_v54  ;;  %v257_v0 = vsub.f32 %v1026_v32, %v1043_v45  ;;  %v273_v3 = vsel %vm199_vm1, %v253_v53, -inf }
  0x20   : > { %819 = vpow2.f32 %v291_v55  ;;  %v299_v4 = vmul.f32 1.442695, %v270_v57  ;;  %v258_v5 = vsub.f32 %v1034_v36, %v1047_v49  ;;  %v274_v9 = vsel %vm199_vm1, %v254_v56, -inf }
  0x21   : > { %821 = vpow2.f32 %v293_v58  ;;  %v301_v10 = vmul.f32 1.442695, %v251_v50  ;;  %v256_v12 = vsub.f32 %v191_v61, %v1030_v34  ;;  %v303_v14 = vmul.f32 1.442695, %v252_v59 }
  0x22   : > { %823 = vpow2.f32 %v295_v60  ;;  %v305_v17 = vmul.f32 1.442695, %v273_v3  ;;  %v277_v21 = vsel %vm199_vm1, %v257_v0, -inf  ;;  %v307_v22 = vmul.f32 1.442695, %v274_v9 }
  0x23   : > { %825 = vpow2.f32 %v297_v63  ;;  %v259_v24 = vsub.f32 %v194_v11, %v1043_v45  ;;  %v278_v25 = vsel %vm199_vm1, %v258_v5, -inf  ;;  %v309_v26 = vmul.f32 1.442695, %v255_v62 }
  0x24   : > { %v1069_v18 = vpop.eup %807  ;;  %827 = vpow2.f32 %v299_v4  ;;  %v260_v28 = vsub.f32 %v195_v16, %v1047_v49  ;;  %v311_v29 = vmul.f32 1.442695, %v256_v12  ;;  %v313_v31 = vmul.f32 1.442695, %v277_v21 }
  0x25   : > { %v810_v23 = vpop.eup %809  ;;  %829 = vpow2.f32 %v301_v10  ;;  %v315_v34 = vmul.f32 1.442695, %v278_v25  ;;  %v317_v38 = vmul.f32 1.442695, %v259_v24  ;;  %v767_v50 = vmul.f32 -1.442695, %v988_v6 }
  0x26   : > { %v812_v27 = vpop.eup %811  ;;  %831 = vpow2.f32 %v303_v14  ;;  %v319_v42 = vmul.f32 1.442695, %v260_v28  ;;  %v768_v54 = vmul.f32 -1.442695, %v991_v7  ;;  %v769_v56 = vmul.f32 -1.442695, %v994_v8 }
  0x27   : > { %v814_v30 = vpop.eup %813  ;;  %833 = vpow2.f32 %v305_v17  ;;  %v770_v60 = vmul.f32 -1.442695, %v1000_v13  ;;  %v771_v8 = vmul.f32 -1.442695, %v1004_v15  ;;  %v773_v15 = vmul.f32 -1.442695, %v1013_v20 }
  0x28   : > { %v816_v33 = vpop.eup %815  ;;  %835 = vpow2.f32 %v307_v22  ;;  %v322_v35 = vsel %vm321_vm2, %v814_v30, 0.0  ;;  %v775_v20 = vmul.f32 -1.442695, %v1034_v36 }
  0x29   : > { %v818_v37 = vpop.eup %817  ;;  %837 = vpow2.f32 %v309_v26  ;;  %v323_v39 = vadd.f32 %v810_v23, %v322_v35  ;;  %v330_v40 = vsel %vm321_vm2, %v816_v33, 0.0  ;;  %v772_v26 = vmul.f32 -1.442695, %v1010_v19 }
  0x2a   : > { %v820_v41 = vpop.eup %819  ;;  %839 = vpow2.f32 %v311_v29  ;;  %v331_v43 = vadd.f32 %v812_v27, %v330_v40  ;;  %v774_v35 = vmul.f32 -1.442695, %v1026_v32 }
  0x2b   : > { %v822_v44 = vpop.eup %821  ;;  %841 = vpow2.f32 %v313_v31  ;;  %v324_v46 = vrot.slane %v323_v39, 4 }
  0x2c   : > { %v824_v45 = vpop.eup %823  ;;  %843 = vpow2.f32 %v315_v34  ;;  %v338_v47 = vsel %vm321_vm2, %v822_v44, 0.0  ;;  %v332_v49 = vrot.slane %v331_v43, 4 }
  0x2d   : > { %v826_v48 = vpop.eup %825  ;;  %845 = vpow2.f32 %v317_v38  ;;  %v339_v52 = vadd.f32 %v818_v37, %v338_v47  ;;  %v346_v53 = vsel %vm321_vm2, %v824_v45, 0.0  ;;  %v325_v58 = vadd.f32 %v324_v46, %v323_v39 }
  0x2e   : > { %v828_v51 = vpop.eup %827  ;;  %847 = vpow2.f32 %v319_v42  ;;  %v333_v62 = vadd.f32 %v332_v49, %v331_v43  ;;  %v347_v63 = vadd.f32 %v820_v41, %v346_v53  ;;  %v432_v43 = vadd.f32 1.0, %v1069_v18 }
  0x2f   : > { %v830_v55 = vpop.eup %829  ;;  %849 = vpow2.f32 %v767_v50  ;;  %v340_v3 = vrot.slane %v339_v52, 4  ;;  %v326_v9 = vrot.slane %v325_v58, 2 }
  0x30   : > { %v832_v57 = vpop.eup %831  ;;  %v354_v59 = vsel %vm321_vm2, %v830_v55, 0.0  ;;  %851 = vpow2.f32 %v768_v54  ;;  %v334_v12 = vrot.slane %v333_v62, 2  ;;  %v348_v14 = vrot.slane %v347_v63, 4 }
  0x31   : > { %v834_v61 = vpop.eup %833  ;;  %v362_v6 = vsel %vm321_vm2, %v832_v57, 0.0  ;;  %v355_v7 = vadd.f32 %v826_v48, %v354_v59  ;;  %853 = vpow2.f32 %v769_v56  ;;  %v341_v21 = vadd.f32 %v340_v3, %v339_v52 }
  0x32   : > { %v836_v0 = vpop.eup %835  ;;  %v363_v10 = vadd.f32 %v828_v51, %v362_v6  ;;  %855 = vpow2.f32 %v770_v60  ;;  %v327_v28 = vadd.f32 %v326_v9, %v325_v58  ;;  %v335_v31 = vadd.f32 %v334_v12, %v333_v62 }
  0x33   : > { %v838_v4 = vpop.eup %837  ;;  %v356_v24 = vrot.slane %v355_v7, 4  ;;  %857 = vpow2.f32 %v771_v8  ;;  %v349_v33 = vadd.f32 %v348_v14, %v347_v63  ;;  %v342_v37 = vrot.slane %v341_v21, 2 }
  0x34   : > { %v840_v5 = vpop.eup %839  ;;  %v370_v11 = vsel %vm321_vm2, %v838_v4, 0.0  ;;  %v364_v29 = vrot.slane %v363_v10, 4  ;;  %v328_v45 = vrot.slane %v327_v28, 1  ;;  %859 = vpow2.f32 %v772_v26 }
  0x35   : > { %v842_v13 = vpop.eup %841  ;;  %v371_v16 = vadd.f32 %v834_v61, %v370_v11  ;;  %v378_v22 = vsel %vm321_vm2, %v840_v5, 0.0  ;;  %v357_v19 = vadd.f32 %v356_v24, %v355_v7  ;;  %v336_v49 = vrot.slane %v335_v31, 1 }
  0x36   : > { %v844_v17 = vpop.eup %843  ;;  %v379_v25 = vadd.f32 %v836_v0, %v378_v22  ;;  %v365_v46 = vadd.f32 %v364_v29, %v363_v10  ;;  %v350_v32 = vrot.slane %v349_v33, 2  ;;  %v343_v53 = vadd.f32 %v342_v37, %v341_v21 }
  0x37   : > { %v846_v23 = vpop.eup %845  ;;  %v372_v34 = vrot.slane %v371_v16, 4  ;;  %861 = vpow2.f32 %v773_v15  ;;  %v358_v56 = vrot.slane %v357_v19, 2  ;;  %v329_v60 = vadd.f32 %v328_v45, %v327_v28 }
  0x38   : > { %v848_v27 = vpop.eup %847  ;;  %v386_v30 = vsel %vm321_vm2, %v846_v23, 0.0  ;;  %v380_v38 = vrot.slane %v379_v25, 4  ;;  %863 = vpow2.f32 %v774_v35  ;;  %v366_v18 = vrot.slane %v365_v46, 2 }
  0x39   : > { %v387_v39 = vadd.f32 %v842_v13, %v386_v30  ;;  %v394_v40 = vsel %vm321_vm2, %v848_v27, 0.0  ;;  %v850_v41 = vpop.eup %849  ;;  %v373_v50 = vadd.f32 %v372_v34, %v371_v16  ;;  %865 = vpow2.f32 %v775_v20 }
  0x3a   : > { %v395_v42 = vadd.f32 %v844_v17, %v394_v40  ;;  %v852_v44 = vpop.eup %851  ;;  %v381_v54 = vadd.f32 %v380_v38, %v379_v25  ;;  %v433_v55 = vadd.f32 1.0, %v850_v41  ;;  %867 = vrcp.f32 %v432_v43 }
  0x3b   : > { %v388_v47 = vrot.slane %v387_v39, 4  ;;  %v854_v48 = vpop.eup %853  ;;  %v434_v36 = vadd.f32 1.0, %v852_v44  ;;  %v374_v61 = vrot.slane %v373_v50, 2  ;;  %v344_v6 = vrot.slane %v343_v53, 1 }
  0x3c   : > { %v396_v51 = vrot.slane %v395_v42, 4  ;;  %v856_v52 = vpop.eup %855  ;;  %v435_v59 = vadd.f32 1.0, %v854_v48  ;;  %v351_v0 = vadd.f32 %v350_v32, %v349_v33  ;;  %v382_v3 = vrot.slane %v381_v54, 2 }
  0x3d   : > { %v389_v57 = vadd.f32 %v388_v47, %v387_v39  ;;  %v436_v62 = vadd.f32 1.0, %v856_v52  ;;  %v858_v63 = vpop.eup %857  ;;  %869 = vrcp.f32 %v433_v55  ;;  %v359_v4 = vadd.f32 %v358_v56, %v357_v19 }
  0x3e   : > { %v397_v58 = vadd.f32 %v396_v51, %v395_v42  ;;  %v437_v8 = vadd.f32 1.0, %v858_v63  ;;  %871 = vrcp.f32 %v434_v36  ;;  %v337_v5 = vadd.f32 %v336_v49, %v335_v31  ;;  %v860_v13 = vpop.eup %859 }
  0x3f   : > { %v390_v7 = vrot.slane %v389_v57, 2  ;;  %v367_v9 = vadd.f32 %v366_v18, %v365_v46  ;;  %873 = vrcp.f32 %v435_v59  ;;  %v375_v11 = vadd.f32 %v374_v61, %v373_v50  ;;  %v482_v61 = vld [vmem:[#allocation2] sm:$0x3] }
  0x40   : > { %v398_v10 = vrot.slane %v397_v58, 2  ;;  %875 = vrcp.f32 %v436_v62  ;;  %v345_v12 = vadd.f32 %v344_v6, %v343_v53  ;;  %v352_v14 = vrot.slane %v351_v0, 1 }
  0x41   : > { %v383_v16 = vadd.f32 %v382_v3, %v381_v54  ;;  %877 = vrcp.f32 %v437_v8  ;;  %v360_v17 = vrot.slane %v359_v4, 1  ;;  %v391_v21 = vadd.f32 %v390_v7, %v389_v57  ;;  %v862_v23 = vpop.eup %861 }
  0x42   : > { %v438_v22 = vadd.f32 1.0, %v860_v13  ;;  %879 = vrcp.f32 %v329_v60  ;;  %v368_v24 = vrot.slane %v367_v9, 1  ;;  %v399_v25 = vadd.f32 %v398_v10, %v397_v58  ;;  %v864_v26 = vpop.eup %863 }
  0x43   : > { %881 = vrcp.f32 %v337_v5  ;;  %v376_v15 = vrot.slane %v375_v11, 1  ;;  %v439_v27 = vadd.f32 1.0, %v862_v23  ;;  %v932_v28 = vmov 1966171168   ;;  %v866_v30 = vpop.eup %865 }
  0x44   : > { %883 = vrcp.f32 %v438_v22  ;;  %v499_v29 = vunpack.c.l.s4 %v932_v28  ;;  %v353_v31 = vadd.f32 %v352_v14, %v351_v0  ;;  %v384_v33 = vrot.slane %v383_v16, 1  ;;  %v868_v35 = vpop.eup %867 }
  0x45   : > { %v440_v34 = vadd.f32 1.0, %v864_v26  ;;  %885 = vrcp.f32 %v345_v12  ;;  %v361_v37 = vadd.f32 %v360_v17, %v359_v4  ;;  %v392_v38 = vrot.slane %v391_v21, 1  ;;  %v484_v26 = vld [vmem:[#allocation2 + $0x4] sm:$0x3] }
  0x46   : > { %v441_v39 = vadd.f32 1.0, %v866_v30  ;;  %887 = vrcp.f32 %v439_v27  ;;  %v369_v41 = vadd.f32 %v368_v24, %v367_v9  ;;  %v400_v19 = vrot.slane %v399_v25, 1  ;;  %v485_v30 = vld [vmem:[#allocation2 + $0x6] sm:$0x3] }
  0x47   : > { %v870_v40 = vpop.eup %869  ;;  %889 = vrcp.f32 %v440_v34  ;;  %v377_v20 = vadd.f32 %v376_v15, %v375_v11  ;;  %v385_v44 = vadd.f32 %v384_v33, %v383_v16  ;;  %v393_v46 = vadd.f32 %v392_v38, %v391_v21  ;;  %v483_v21 = vld [vmem:[#allocation2 + $0x2] sm:$0x3] }
  0x48   : > { %v872_v42 = vpop.eup %871  ;;  %891 = vrcp.f32 %v441_v39  ;;  %v500_v47 = vunpack.c.0.s8 %v499_v29  ;;  %v401_v49 = vadd.f32 %v400_v19, %v399_v25  ;;  %v606_v39 = vsub.s32 0, %v967_v2 }
  0x49   : > { %v874_v43 = vpop.eup %873  ;;  %893 = vrcp.f32 %v353_v31 }
  0x4a   : > { %v876_v45 = vpop.eup %875  ;;  %895 = vrcp.f32 %v361_v37  ;;  %v503_v54 = vsub.s32 %v500_v47, %v967_v2 }
  0x4b   : > { %v878_v48 = vpop.eup %877  ;;  %897 = vrcp.f32 %v369_v41 }
  0x4c   : > { %v880_v32 = vpop.eup %879  ;;  %899 = vrcp.f32 %v377_v20 }
  0x4d   : > { %v882_v50 = vpop.eup %881  ;;  %901 = vrcp.f32 %v385_v44  ;;  %v472_v51 = vmul.f32 %v880_v32, %v868_v35  ;;  %v486_v35 = vld [vmem:[#allocation2 + $0x8] sm:$0x3] }
  0x4e   : > { %v884_v52 = vpop.eup %883  ;;  %903 = vrcp.f32 %v393_v46  ;;  %v473_v53 = vmul.f32 %v882_v50, %v870_v40  ;;  %v610_v40 = vsub.s32 1, %v967_v2 }
  0x4f   : > { %v886_v55 = vpop.eup %885  ;;  %905 = vrcp.f32 %v401_v49 }
  0x50   : > { %v888_v56 = vpop.eup %887  ;;  %v497_v57 = vcombine.high %v472_v51, %v473_v53  ;;  %v474_v58 = vmul.f32 %v886_v55, %v872_v42 }
  0x51   : > { %v890_v36 = vpop.eup %889 }
  0x52   : > { %v892_v18 = vpop.eup %891  ;;  %v504_v59 = vrot.slane %v497_v57, %v503_v54 }
  0x53   : > { %v894_v60 = vpop.eup %893 }
  0x54   : > { %v896_v62 = vpop.eup %895  ;;  %v475_v63 = vmul.f32 %v894_v60, %v874_v43  ;;  %v511_v6 = vrot.slane %v504_v59, %v503_v54 }
  0x55   : > { %v898_v0 = vpop.eup %897  ;;  %v476_v3 = vmul.f32 %v896_v62, %v876_v45 }
  0x56   : > { %v900_v4 = vpop.eup %899  ;;  %v477_v7 = vmul.f32 %v898_v0, %v878_v48  ;;  %v512_v8 = vcombine.high %v474_v58, %v475_v63  ;;  %v577_v5 = vmax.f32 %v482_v61, %v511_v6 }
  0x57   : > { %v902_v9 = vpop.eup %901  ;;  %v478_v10 = vmul.f32 %v900_v4, %v884_v52 }
  0x58   : > { %v904_v11 = vpop.eup %903  ;;  %v479_v13 = vmul.f32 %v902_v9, %v888_v56  ;;  %v519_v12 = vrot.slane %v512_v8, %v503_v54  ;;  %v527_v14 = vcombine.high %v476_v3, %v477_v7  ;;  %586 = vst.msk [vmem:[#allocation2] sm:$0x3] %vm963_vm0, %v577_v5 }
  0x59   : > { %v906_v16 = vpop.eup %905  ;;  %v480_v17 = vmul.f32 %v904_v11, %v890_v36 }
  0x5a   : > { %v481_v22 = vmul.f32 %v906_v16, %v892_v18  ;;  %v526_v23 = vrot.slane %v519_v12, %v503_v54  ;;  %v534_v24 = vrot.slane %v527_v14, %v503_v54  ;;  %v542_v25 = vcombine.high %v478_v10, %v479_v13 }
  0x5c   : > { %v541_v15 = vrot.slane %v534_v24, %v503_v54  ;;  %v549_v27 = vrot.slane %v542_v25, %v503_v54  ;;  %v557_v28 = vcombine.high %v480_v17, %v481_v22  ;;  %v578_v29 = vmax.f32 %v483_v21, %v526_v23 }
  0x5e   : > { %v556_v31 = vrot.slane %v549_v27, %v503_v54  ;;  %v564_v33 = vrot.slane %v557_v28, %v503_v54  ;;  %v579_v34 = vmax.f32 %v484_v26, %v541_v15  ;;  %587 = vst.msk [vmem:[#allocation2 + $0x2] sm:$0x3] %vm963_vm0, %v578_v29 }
  0x5f   : > { %v594_v41 = vld [vmem:[#allocation2] sm:$0x3] }
  0x60   : > { %v571_v37 = vrot.slane %v564_v33, %v503_v54  ;;  %v580_v38 = vmax.f32 %v485_v30, %v556_v31  ;;  %588 = vst.msk [vmem:[#allocation2 + $0x4] sm:$0x3] %vm963_vm0, %v579_v34  ;;  %v607_v42 = vrot.slane %v594_v41, %v606_v39  ;;  %v611_v20 = vrot.slane %v594_v41, %v610_v40 }
  0x62   : > { %v581_v19 = vmax.f32 %v486_v35, %v571_v37  ;;  %589 = vst.msk [vmem:[#allocation2 + $0x6] sm:$0x3] %vm963_vm0, %v580_v38  ;;  %v655_v49 = vsel %vm654_vm3, %v607_v42, -inf  ;;  %v656_v2 = vsel %vm654_vm3, %v611_v20, -inf }
  0x64   : > { %590 = vst.msk [vmem:[#allocation2 + $0x8] sm:$0x3] %vm963_vm0, %v581_v19 }
  0x65   : > { %v595_v43 = vld [vmem:[#allocation2 + $0x2] sm:$0x3] }
  0x66   : > { %v615_v44 = vrot.slane %v595_v43, %v606_v39  ;;  %v619_v45 = vrot.slane %v595_v43, %v610_v40 }
  0x67   : > { %v596_v46 = vld [vmem:[#allocation2 + $0x4] sm:$0x3] }
  0x68   : > { %v623_v47 = vrot.slane %v596_v46, %v606_v39  ;;  %v627_v48 = vrot.slane %v596_v46, %v610_v40  ;;  %v657_v50 = vsel %vm654_vm3, %v615_v44, -inf  ;;  %v658_v51 = vsel %vm654_vm3, %v619_v45, -inf }
  0x69   : > { %v597_v32 = vld [vmem:[#allocation2 + $0x6] sm:$0x3] }
  0x6a   : > { %v631_v1 = vrot.slane %v597_v32, %v606_v39  ;;  %v635_v52 = vrot.slane %v597_v32, %v610_v40  ;;  %v659_v53 = vsel %vm654_vm3, %v623_v47, -inf  ;;  %v661_v54 = vsel %vm654_vm3, %v627_v48, -inf }
  0x6b   : > { %v598_v55 = vld [vmem:[#allocation2 + $0x8] sm:$0x3]  ;;  %v660_v56 = vmax.f32 %v655_v49, %v659_v53  ;;  %v662_v57 = vmax.f32 %v656_v2, %v661_v54 }
  0x6c   : > { %v639_v36 = vrot.slane %v598_v55, %v606_v39  ;;  %v643_v18 = vrot.slane %v598_v55, %v610_v40  ;;  %v663_v58 = vsel %vm654_vm3, %v631_v1, -inf  ;;  %v665_v59 = vsel %vm654_vm3, %v635_v52, -inf }
  0x6d   : > { %v664_v60 = vmax.f32 %v657_v50, %v663_v58  ;;  %v666_v61 = vmax.f32 %v658_v51, %v665_v59 }
  0x6e   : > { %v667_v62 = vsel %vm654_vm3, %v639_v36, -inf  ;;  %v669_v63 = vsel %vm654_vm3, %v643_v18, -inf }
  0x6f   : > { %v668_v6 = vmax.f32 %v660_v56, %v667_v62  ;;  %v670_v0 = vmax.f32 %v662_v57, %v669_v63  ;;  %v672_v3 = vmax.f32 %v664_v60, %v666_v61 }
  0x71   : > { %v671_v4 = vmax.f32 %v668_v6, %v670_v0 }
  0x73   : > { %v673_v7 = vmax.f32 %v671_v4, %v672_v3 }
  0x75   : > { %674 = vmax.xlane.f32.xlu0 %v673_v7 }
 0x102   : > { %v675_v8 = vpop.xlane.xlu0 %674 }
 0x103   : > { %v676_v5 = vrot.slane %v675_v8, 4 }
 0x105   : > { %v677_v9 = vmax.f32 %v675_v8, %v676_v5 }
 0x107   : > { %v678_v10 = vrot.slane %v677_v9, 2 }
 0x109   : > { %v679_v11 = vmax.f32 %v677_v9, %v678_v10 }
 0x10b   : > { %v680_v13 = vrot.slane %v679_v11, 1 }
 0x10d   : > { %v681_v12 = vmax.f32 %v679_v11, %v680_v13 }
 0x10f   : > { %779 = vpush %v681_v12 }
 0x140   : > { %s780_s17 = spop %779 }
 0x141   : > { %v683_v14 = vstv %s780_s17 }
 0x142   : > { %685 = vst.msk [vmem:[%s162_s16] sm:$0x1] %vm684_vm4, %v683_v14 }
 0x143 PF: > { %s11_s8 = sadd.s32 1, %s929_s8   ;;  %s1137_s6 = smov %s925_s7 }
 0x144   : > { %p8_p5 = scmp.ge.s32.totalorder %s11_s8, 4   ;;  %s1138_s7 = smov %s1140_s9 }
 0x146   :  { %10 = sbr.rel (!%p8_p5) target bundleno = 2 (0x2), region = 62 }

</bundles_post_ra>
